<compile_context>
chip_gen: v7x
topology: tpu7x:2x2x1
jax: 0.10.0
libtpu: 0.0.40
codegen_flags: <defaults>
</compile_context>

<pallas_src>
import math
import functools

import jax
import jax.numpy as jnp
from jax import lax
from jax.experimental import pallas as pl
from jax.experimental.pallas import tpu as pltpu


def _sa_kernel(xq_ref, xkv_ref, pad_ref, attn_ref, o_ref):
    # xq_ref:   (TQ, D)  query rows for this (batch, q-tile)
    # xkv_ref:  (S,  D)  full sequence for this batch element (keys / values)
    # pad_ref:  (1,  S)  key-validity row for this batch element
    # attn_ref: (TQ, S)  attn-mask rows for this q-tile (shared across batch)
    # o_ref:    (TQ, D)
    xq = xq_ref[...]
    xkv = xkv_ref[...]
    pad_row = pad_ref[...]      # (1, S)
    attn = attn_ref[...]        # (TQ, S)

    d = xkv.shape[-1]
    scale = 1.0 / math.sqrt(d)

    # scores = xq @ xkv^T / sqrt(D) — contract on last dims, no transpose.
    scores = lax.dot_general(
        xq, xkv,
        dimension_numbers=(((1,), (1,)), ((), ())),
        preferred_element_type=jnp.float32,
    ) * scale

    # masked_fill(mask == 0.0, -1e9) for both masks, fused into one select.
    keep = (pad_row != 0.0) & (attn != 0.0)          # (1,S) & (TQ,S) -> (TQ,S)
    scores = jnp.where(keep, scores, jnp.float32(-1000000000.0))

    # numerically stable softmax along keys
    m = jnp.max(scores, axis=-1, keepdims=True)
    e = jnp.exp(scores - m)
    denom = jnp.sum(e, axis=-1, keepdims=True)
    prob = e * pl.reciprocal(denom, approx=True)     # EUP slot, ~free

    # dropout (eval mode) = identity

    # output = prob @ xkv
    out = jnp.dot(prob.astype(xkv.dtype), xkv, preferred_element_type=jnp.float32)
    o_ref[...] = out.astype(o_ref.dtype)


def _choose_tq(S):
    """Query tile: full S when small, else a 128-aligned divisor (~256 best)."""
    if S <= 256:
        return S
    for cand in (256, 512, 128, 64, 32, 16, 8):
        if S % cand == 0:
            return cand
    return S


@functools.partial(jax.jit, static_argnames=("tq",))
def _sa_pallas(x, attn_mask, pad_mask, tq):
    B, S, D = x.shape
    num_q = S // tq
    pad3 = pad_mask.reshape(B, 1, S)

    return pl.pallas_call(
        _sa_kernel,
        out_shape=jax.ShapeDtypeStruct((B, S, D), x.dtype),
        grid_spec=pltpu.PrefetchScalarGridSpec(
            num_scalar_prefetch=0,
            grid=(B, num_q),
            in_specs=[
                # x as Q: (TQ, D) tile per (batch, q-tile)
                pl.BlockSpec((None, tq, D), lambda b, q: (b, q, 0)),
                # x as K/V: full (S, D), resident across q-tiles of a batch elem
                pl.BlockSpec((None, S, D), lambda b, q: (b, 0, 0)),
                # key-validity row (1, S) per batch element
                pl.BlockSpec((None, 1, S), lambda b, q: (b, 0, 0)),
                # attn-mask rows (TQ, S), shared across batch
                pl.BlockSpec((tq, S), lambda b, q: (q, 0)),
            ],
            out_specs=pl.BlockSpec((None, tq, D), lambda b, q: (b, q, 0)),
        ),
        compiler_params=pltpu.CompilerParams(
            dimension_semantics=("parallel", "parallel"),
        ),
    )(x, x, pad3, attn_mask)


def sa_forward(x, attn_mask, pad_mask, *, tq=None):
    """Pallas self-attention.

    x:         (B, S, D)
    attn_mask: (S, S)  (1.0 = attend, 0.0 = masked) or None
    pad_mask:  (B, S)  per-batch key-validity (the usual key-padding mask that
               the PyTorch module receives broadcast as (B, 1, S)) or None
    """
    B, S, D = x.shape
    if pad_mask is None:
        pad_mask = jnp.ones((B, S), dtype=x.dtype)
    if attn_mask is None:
        attn_mask = jnp.ones((S, S), dtype=x.dtype)
    if tq is None:
        tq = _choose_tq(S)
    return _sa_pallas(x, attn_mask, pad_mask, int(tq))


def sa_reference(x, attn_mask, pad_mask):
    """Pure-JAX reference matching the PyTorch forward (eval-mode dropout)."""
    d = x.shape[-1]
    scores = jnp.einsum("bqd,bkd->bqk", x, x) / math.sqrt(d)
    scores = jnp.where(pad_mask[:, None, :] == 0.0, -1000000000.0, scores)
    scores = jnp.where(attn_mask[None, ...] == 0.0, -1000000000.0, scores)
    prob = jax.nn.softmax(scores, axis=-1)
    return jnp.einsum("bqk,bkd->bqd", prob, x)


if __name__ == "__main__":
    key = jax.random.PRNGKey(0)
    (kx,) = jax.random.split(key, 1)

    B, S, D = 2, 8, 32
    x = jax.random.normal(kx, (B, S, D), dtype=jnp.float32)

    # pad_mask: 1.0 for valid key positions, 0.0 for padded ones (per batch).
    valid_lens = jnp.array([S, S - 2])
    key_ids = jnp.arange(S)[None, :]                                  # (1, S)
    pad_mask = (key_ids < valid_lens[:, None]).astype(jnp.float32)    # (B, S)

    # attn_mask: causal lower-triangular (S, S), 1.0 = attend, 0.0 = masked.
    attn_mask = jnp.tril(jnp.ones((S, S), dtype=jnp.float32))

    out = sa_forward(x, attn_mask, pad_mask)
    jax.block_until_ready(out)

    ref = sa_reference(x, attn_mask, pad_mask)
    assert out.shape == (B, S, D)
    max_err = float(jnp.max(jnp.abs(out - ref)))
    assert jnp.allclose(out, ref, atol=5e-3, rtol=5e-3), f"max err = {max_err}"

    print("KERNEL_OK")
</pallas_src>

<mosaic_0001>
module attributes {stable_mosaic.version = 11 : i64} {
  func.func @_sa_kernel(%arg0: i32, %arg1: i32, %arg2: memref<1x8x32xf32, #tpu.memory_space<vmem>>, %arg3: memref<1x8x32xf32, #tpu.memory_space<vmem>>, %arg4: memref<1x1x8xf32, #tpu.memory_space<vmem>>, %arg5: memref<8x8xf32, #tpu.memory_space<vmem>>, %arg6: memref<1x8x32xf32, #tpu.memory_space<vmem>>) attributes {dimension_semantics = [#tpu.dimension_semantics<parallel>, #tpu.dimension_semantics<parallel>], iteration_bounds = array<i64: 2, 1>, scalar_prefetch = 0 : i64, scratch_operands = 0 : i64, tpu.core_type = #tpu.core_type<tc>, window_params = [{transform_indices = @transform_0, window_bounds = array<i64: 1, 8, 32>}, {transform_indices = @transform_1, window_bounds = array<i64: 1, 8, 32>}, {transform_indices = @transform_2, window_bounds = array<i64: 1, 1, 8>}, {transform_indices = @transform_3, window_bounds = array<i64: 8, 8>}, {transform_indices = @transform_4, window_bounds = array<i64: 1, 8, 32>}]} {
    %c0 = arith.constant 0 : index
    %c0_0 = arith.constant 0 : index
    %c0_1 = arith.constant 0 : index
    %0 = vector.load %arg2[%c0, %c0_0, %c0_1] : memref<1x8x32xf32, #tpu.memory_space<vmem>>, vector<1x8x32xf32>
    %1 = vector.shape_cast %0 : vector<1x8x32xf32> to vector<8x32xf32>
    %c0_2 = arith.constant 0 : index
    %c0_3 = arith.constant 0 : index
    %c0_4 = arith.constant 0 : index
    %2 = vector.load %arg3[%c0_2, %c0_3, %c0_4] : memref<1x8x32xf32, #tpu.memory_space<vmem>>, vector<1x8x32xf32>
    %3 = vector.shape_cast %2 : vector<1x8x32xf32> to vector<8x32xf32>
    %c0_5 = arith.constant 0 : index
    %c0_6 = arith.constant 0 : index
    %c0_7 = arith.constant 0 : index
    %4 = vector.load %arg4[%c0_5, %c0_6, %c0_7] : memref<1x1x8xf32, #tpu.memory_space<vmem>>, vector<1x1x8xf32>
    %5 = vector.shape_cast %4 : vector<1x1x8xf32> to vector<1x8xf32>
    %c0_8 = arith.constant 0 : index
    %c0_9 = arith.constant 0 : index
    %6 = vector.load %arg5[%c0_8, %c0_9] : memref<8x8xf32, #tpu.memory_space<vmem>>, vector<8x8xf32>
    %cst = arith.constant dense<0.000000e+00> : vector<8x8xf32>
    %7 = tpu.matmul %1, %3, %cst {dimension_numbers = #tpu.dot_dimension_numbers<[1], [1], [0], [0], [0, 0, 1, 0], [], []>} : vector<8x32xf32>, vector<8x32xf32>, vector<8x8xf32> -> vector<8x8xf32>
    %cst_10 = arith.constant 0.176776692 : f32
    %8 = vector.broadcast %cst_10 : f32 to vector<8x8xf32>
    %9 = arith.mulf %7, %8 : vector<8x8xf32>
    %cst_11 = arith.constant 0.000000e+00 : f32
    %10 = vector.broadcast %cst_11 : f32 to vector<1x8xf32>
    %11 = arith.cmpf one, %5, %10 : vector<1x8xf32>
    %cst_12 = arith.constant 0.000000e+00 : f32
    %12 = vector.broadcast %cst_12 : f32 to vector<8x8xf32>
    %13 = arith.cmpf one, %6, %12 : vector<8x8xf32>
    %14 = vector.broadcast %11 : vector<1x8xi1> to vector<8x8xi1>
    %15 = arith.andi %14, %13 : vector<8x8xi1>
    %cst_13 = arith.constant -1.000000e+09 : f32
    %16 = vector.broadcast %cst_13 : f32 to vector<8x8xf32>
    %17 = arith.select %15, %9, %16 : vector<8x8xi1>, vector<8x8xf32>
    %cst_14 = arith.constant dense<0xFF800000> : vector<8xf32>
    %18 = vector.multi_reduction <maximumf>, %17, %cst_14 [1] : vector<8x8xf32> to vector<8xf32>
    %19 = vector.shape_cast %18 : vector<8xf32> to vector<8x1xf32>
    %20 = vector.broadcast %19 : vector<8x1xf32> to vector<8x8xf32>
    %21 = arith.subf %17, %20 : vector<8x8xf32>
    %22 = math.exp %21 : vector<8x8xf32>
    %cst_15 = arith.constant dense<0.000000e+00> : vector<8xf32>
    %23 = vector.multi_reduction <add>, %22, %cst_15 [1] : vector<8x8xf32> to vector<8xf32>
    %24 = vector.shape_cast %23 : vector<8xf32> to vector<8x1xf32>
    %25 = tpu.reciprocal %24 {approx = true} : vector<8x1xf32> -> vector<8x1xf32>
    %26 = vector.broadcast %25 : vector<8x1xf32> to vector<8x8xf32>
    %27 = arith.mulf %22, %26 : vector<8x8xf32>
    %cst_16 = arith.constant dense<0.000000e+00> : vector<8x32xf32>
    %28 = tpu.matmul %27, %3, %cst_16 {dimension_numbers = #tpu.dot_dimension_numbers<[1], [0], [0], [1], [0, 0, 1, 1], [], []>} : vector<8x8xf32>, vector<8x32xf32>, vector<8x32xf32> -> vector<8x32xf32>
    %c0_17 = arith.constant 0 : index
    %c0_18 = arith.constant 0 : index
    %c0_19 = arith.constant 0 : index
    %29 = vector.load %arg6[%c0_17, %c0_18, %c0_19] : memref<1x8x32xf32, #tpu.memory_space<vmem>>, vector<1x8x32xf32>
    %30 = vector.shape_cast %29 : vector<1x8x32xf32> to vector<8x32xf32>
    %31 = vector.shape_cast %28 : vector<8x32xf32> to vector<1x8x32xf32>
    tpu.vector_store %arg6[%c0_17, %c0_18, %c0_19], %31 {strides = array<i32>} : memref<1x8x32xf32, #tpu.memory_space<vmem>>, vector<1x8x32xf32>,
    return
  }
  func.func @transform_0(%arg0: i32, %arg1: i32) -> (i32, i32, i32) {
    %c0_i32 = arith.constant 0 : i32
    %c0_i32_0 = arith.constant 0 : i32
    return %arg0, %arg1, %c0_i32 : i32, i32, i32
  }
  func.func @transform_1(%arg0: i32, %arg1: i32) -> (i32, i32, i32) {
    %c0_i32 = arith.constant 0 : i32
    %c0_i32_0 = arith.constant 0 : i32
    %c0_i32_1 = arith.constant 0 : i32
    return %arg0, %c0_i32, %c0_i32_0 : i32, i32, i32
  }
  func.func @transform_2(%arg0: i32, %arg1: i32) -> (i32, i32, i32) {
    %c0_i32 = arith.constant 0 : i32
    %c0_i32_0 = arith.constant 0 : i32
    %c0_i32_1 = arith.constant 0 : i32
    return %arg0, %c0_i32, %c0_i32_0 : i32, i32, i32
  }
  func.func @transform_3(%arg0: i32, %arg1: i32) -> (i32, i32) {
    %c0_i32 = arith.constant 0 : i32
    %c0_i32_0 = arith.constant 0 : i32
    return %arg1, %c0_i32 : i32, i32
  }
  func.func @transform_4(%arg0: i32, %arg1: i32) -> (i32, i32, i32) {
    %c0_i32 = arith.constant 0 : i32
    %c0_i32_0 = arith.constant 0 : i32
    return %arg0, %arg1, %c0_i32 : i32, i32, i32
  }
}

</mosaic_0001>

<bundles_post_ra>
// kernel: _sa_pallas.1
= control target key start
LH: loop header
LB: loop body
LE: loop exit
PB: predicated region body
PF: predicated region fallthrough
CT: control target
= control target key end

     0   :  { %s1209_s0 = inlined_call_operand.hbm [shape: f32[2,8,32], index: 0, kind: input, shape index: {}, may-alias: {0,1}]   ;;  %s1210_s1 = inlined_call_operand.hbm [shape: f32[2,8,32], index: 1, kind: input, shape index: {}, may-alias: {0,1}]   ;;  %s1211_s2 = inlined_call_operand.vmem [shape: f32[2,1,8], index: 2, kind: input, shape index: {}]   ;;  %s1212_s3 = inlined_call_operand.hbm [shape: f32[8,8], index: 3, kind: input, shape index: {}]   ;;  %s1213_s4 = inlined_call_operand.hbm [shape: f32[2,8,32], index: 4, kind: output, shape index: {}]  }
   0x1   :  { %1220 = sst [smem:[#allocation15_spill]] %s1212_s3 }
   0x2   :  { %9 = vsyncpa [#allocation3], 0 }
   0x3   :  { %11 = vsyncpa [#allocation3 + $0x1], 0 }
   0x4   :  { %12 = vsyncpa [#allocation6], 0 }
   0x5   :  { %14 = vsyncpa [#allocation6 + $0x1], 0 }
   0x6   :  { %15 = vsyncpa [#allocation4], 0 }
   0x7   :  { %17 = vsyncpa [#allocation4 + $0x1], 0  ;;  %s948_s15 = smov 0   ;;  %s950_s16 = smov 0  }
   0x8   :  { %s952_s17 = smov 0   ;;  %s954_s18 = smov 0  }
   0x9   :  { %s956_s19 = smov 0   ;;  %s958_s20 = smov 0  }
   0xa LB: > { %1221 = sst [smem:[#allocation13_spill]] %s910_s19  ;;  %s979_s21 = sadd.s32 4294967295, %s914_s20   ;;  %s914_s20 = sphi %s958_s20, %s23_s20   ;;  %s910_s19 = sphi %s956_s19, %s1241_s19   ;;  %s906_s18 = sphi %s954_s18, %s1240_s18   ;;  %s902_s17 = sphi %s952_s17, %s1244_s17   ;;  %s898_s16 = sphi %s950_s16, %s1243_s16   ;;  %s894_s15 = sphi %s948_s15, %s1242_s15  }
   0xb   : > { %s617_s22 = sadd.s32 4294967294, %s914_s20   ;;  %p57_p0 = scmp.ne.s32.totalorder %s898_s16, %s894_s15 }
   0xc   : > { %p1214_p1 = scmp.eq.s32.totalorder %s979_s21, 0  ;;  %p167_p3 = scmp.eq.s32.totalorder %s617_s22, 1 }
   0xd   : > { %p618_p5 = scmp.ge.s32.totalorder %s914_s20, 1  ;;  %p174_p7 = scmp.lt.s32.totalorder %s914_s20, 3 }
   0xe   : > { %p988_p4 = por %p1214_p1, %p57_p0  ;;  %p993_p6 = por %p167_p3, %p57_p0 }
   0xf   : > { %p998_p8 = pnand %p618_p5, %p174_p7  ;;  %s916_s26 = smov [#allocation7]  }
  0x10   : > { %s1222_s23 = scalar_select %p988_p4, 1, 0 }
  0x11   : > { %s1223_s24 = scalar_select %p993_p6, 1, 0 }
  0x12   : > { %s1224_s25 = scalar_select %p998_p8, 1, 0 }
  0x13   : > { %s189_s27 = sshll.u32 %s916_s26, 4  ;;  %p661_p10 = pneg %p998_p8  ;;  %s190_s27 = int_to_ptr.vmem [resolvable:$true] %s189_s27 }
  0x14   : > { %s35_s29 = sadd.s32 1, %s910_s19  ;;  %s44_s30 = sadd.s32 1, %s902_s17 }
  0x15   : > { %p1007_p11 = pnand %p661_p10, %p1214_p1  ;;  %p1013_p12 = scmp.ge.s32.totalorder %s35_s29, 2 }
  0x16   : > { %s1227_s3 = sld [smem:[#allocation15_spill]] }
  0x17   : > { %s1226_s5 = scalar_select %p1013_p12, 1, 0 }
  0x18   : > { %p738_p0 = pneg %p1007_p11 }
  0x1c   : > { %s736_s8 = scalar_lea.hbm %s1227_s3, 128 }
  0x1d   : > { %p737_p13 = scmp.ne.s32.totalorder %s1227_s3, %s736_s8  ;;  %p743_p7 = scmp.lt.u32.totalorder %s736_s8, %s1227_s3 }
  0x1f   : > { %p739_p3 = pnand %p738_p0, %p737_p13 }
  0x21   : > { %p740_p5 = pneg %p739_p3 }
  0x23   : > { %p745_p10 = pnand %p743_p7, %p740_p5 }
  0x25   : > { %748 = shalt.err (!%p745_p10)
}
  0x26   : > { %s749_s13 = scalar_lea.vmem %s190_s27, 128  ;;  %p757_p6 = scmp.lt.s32.totalorder %s190_s27, %s190_s27 }
  0x27   : > { %p750_p9 = scmp.ne.s32.totalorder %s190_s27, %s749_s13  ;;  %p758_p4 = scmp.lt.s32.totalorder %s749_s13, %s749_s13 }
  0x29   : > { %p752_p1 = pnand %p750_p9, %p738_p0  ;;  %p759_p8 = por %p758_p4, %p757_p6 }
  0x2b   : > { %p753_p2 = pneg %p752_p1 }
  0x2d   : > { %p760_p12 = pnand %p759_p8, %p753_p2 }
  0x2f   : > { %763 = shalt.err (!%p760_p12)
}
  0x30   : > { %664 = dma.hbm_to_vmem [thread:$0]  (!%p1007_p11), %s1227_s3, 128, %s190_s27, [#allocation6]  }
  0x31   : > { %p1228_p1 = scmp.ne.s32.totalorder %s1226_s5, 0  ;;  %p51_p2 = scmp.ne.s32.totalorder %s902_s17, %s898_s16 }
  0x32   : > { %p52_p4 = scmp.eq.s32.totalorder %s914_s20, 0  ;;  %p677_p6 = scmp.lt.s32.totalorder %s914_s20, 2 }
  0x33   : > { %s1246_s29 = smov (%p1228_p1, %s35_s29), 0  ;;  %p1230_p12 = scmp.eq.s32.totalorder %s979_s21, 1 }
  0x34   : > { %1229 = sst [smem:[#allocation14_spill]] %s1246_s29  ;;  %s39_s26 = ssub.s32 %s910_s19, %s1246_s29 }
  0x35   : > { %p42_p8 = scmp.eq.s32.totalorder %s39_s26, 0  ;;  %p53_p9 = por %p52_p4, %p51_p2 }
  0x36   : > { %p1045_p13 = por %p1230_p12, %p51_p2  ;;  %s200_s6 = sand.u32 1, %s902_s17  }
  0x37   : > { %s1053_s7 = scalar_select %p42_p8, %s902_s17, %s44_s30  }
  0x38   : > { %s1231_s28 = scalar_select %p1045_p13, 1, 0 }
  0x39   : > { %s1055_s27 = sshll.u32 %s200_s6, 3  ;;  %s622_s5 = sshll.u32 %s910_s19, 7 }
  0x3a   : > { %s1061_s10 = scalar_lea.hbm %s1209_s0, %s622_s5  ;;  %s204_s11 = scalar_lea.vmem [#allocation2], %s1055_s27 }
  0x3b   : > { %s212_s12 = sshll.u32 %s204_s11, 4  ;;  %p1066_p11 = pnand %p677_p6, %p53_p9  ;;  %s1064_s12 = int_to_ptr.vmem [resolvable:$true] %s212_s12 }
  0x3c   : > { %s1073_s22 = scalar_lea.hbm %s1210_s1, %s622_s5  ;;  %s219_s26 = sand.u32 1, %s914_s20  }
  0x3d   : > { %s201_s8 = scalar_lea.sflag [#allocation3], %s200_s6  ;;  %s764_s9 = scalar_lea.hbm %s1061_s10, 128 }
  0x3e   : > { %p765_p0 = scmp.ne.s32.totalorder %s1061_s10, %s764_s9  ;;  %p766_p3 = pneg %p1066_p11 }
  0x3f   : > { %s769_s29 = scalar_lea.hbm %s1209_s0, 256  ;;  %p770_p10 = scmp.lt.u32.totalorder %s1061_s10, %s1209_s0 }
  0x40   : > { %p767_p5 = pnand %p766_p3, %p765_p0  ;;  %p771_p1 = scmp.lt.u32.totalorder %s769_s29, %s764_s9 }
  0x41   : > { %p773_p4 = scmp.lt.u32.totalorder %s764_s9, %s1061_s10 }
  0x42   : > { %p768_p7 = pneg %p767_p5  ;;  %p772_p2 = por %p771_p1, %p770_p10 }
  0x44   : > { %p774_p6 = por %p773_p4, %p772_p2 }
  0x46   : > { %p775_p8 = pnand %p774_p6, %p768_p7 }
  0x48   : > { %778 = shalt.err (!%p775_p8)
}
  0x49   : > { %s779_s6 = scalar_lea.vmem %s1064_s12, 128  ;;  %s917_s3 = smov [#allocation2]  }
  0x4a   : > { %p780_p9 = scmp.ne.s32.totalorder %s1064_s12, %s779_s6  ;;  %s784_s5 = sshll.u32 %s917_s3, 4  ;;  %s785_s5 = int_to_ptr.vmem [resolvable:$false] %s784_s5 }
  0x4b   : > { %s786_s19 = scalar_lea.vmem %s785_s5, 256  ;;  %p787_p5 = scmp.lt.s32.totalorder %s1064_s12, %s785_s5 }
  0x4c   : > { %p782_p12 = pnand %p780_p9, %p766_p3  ;;  %p788_p10 = scmp.lt.s32.totalorder %s786_s19, %s779_s6 }
  0x4e   : > { %p783_p0 = pneg %p782_p12  ;;  %p789_p1 = por %p788_p10, %p787_p5 }
  0x50   : > { %p790_p2 = pnand %p789_p1, %p783_p0 }
  0x52   : > { %793 = shalt.err (!%p790_p2)
}
  0x53   : > { %668 = dma.hbm_to_vmem [thread:$0]  (!%p1066_p11), %s1061_s10, 128, %s1064_s12, %s201_s8  }
  0x54   : > { %s223_s29 = scalar_lea.vmem [#allocation5], %s1055_s27  ;;  %s220_s9 = scalar_lea.sflag [#allocation6], %s219_s26 }
  0x55   : > { %s230_s14 = sshll.u32 %s223_s29, 4  ;;  %s794_s11 = scalar_lea.hbm %s1073_s22, 128  ;;  %s231_s14 = int_to_ptr.vmem [resolvable:$true] %s230_s14 }
  0x56   : > { %p795_p7 = scmp.ne.s32.totalorder %s1073_s22, %s794_s11  ;;  %s799_s3 = scalar_lea.hbm %s1210_s1, 256 }
  0x57   : > { %p800_p8 = scmp.lt.u32.totalorder %s1073_s22, %s1210_s1  ;;  %p801_p9 = scmp.lt.u32.totalorder %s799_s3, %s794_s11 }
  0x58   : > { %p797_p4 = pnand %p795_p7, %p766_p3  ;;  %p803_p0 = scmp.lt.u32.totalorder %s794_s11, %s1073_s22 }
  0x59   : > { %p802_p12 = por %p801_p9, %p800_p8 }
  0x5a   : > { %p798_p6 = pneg %p797_p4 }
  0x5b   : > { %p804_p5 = por %p803_p0, %p802_p12 }
  0x5d   : > { %p805_p10 = pnand %p804_p5, %p798_p6 }
  0x5f   : > { %808 = shalt.err (!%p805_p10)
}
  0x60   : > { %s809_s27 = scalar_lea.vmem %s231_s14, 128  ;;  %s918_s10 = smov [#allocation5]  }
  0x61   : > { %p810_p1 = scmp.ne.s32.totalorder %s231_s14, %s809_s27  ;;  %s814_s12 = sshll.u32 %s918_s10, 4  ;;  %s815_s12 = int_to_ptr.vmem [resolvable:$false] %s814_s12 }
  0x62   : > { %s816_s26 = scalar_lea.vmem %s815_s12, 256  ;;  %p817_p4 = scmp.lt.s32.totalorder %s231_s14, %s815_s12 }
  0x63   : > { %p812_p2 = pnand %p810_p1, %p766_p3  ;;  %p818_p13 = scmp.lt.s32.totalorder %s816_s26, %s809_s27 }
  0x65   : > { %p813_p7 = pneg %p812_p2  ;;  %p819_p8 = por %p818_p13, %p817_p4 }
  0x67   : > { %p820_p9 = pnand %p819_p8, %p813_p7 }
  0x69   : > { %823 = shalt.err (!%p820_p9)
}
  0x6a   : > { %671 = dma.hbm_to_vmem [thread:$0]  (!%p1066_p11), %s1073_s22, 128, %s231_s14, %s220_s9  }
  0x6b   : > { %p1233_p6 = scmp.ne.s32.totalorder %s1224_s25, 0 }
  0x6c   : > { %s1126_s8 = sand.u32 (!%p1233_p6), 1, %s898_s16   ;;  %p1234_p13 = scmp.ne.s32.totalorder (!%p1233_p6), %s1222_s23, 0 }
  0x6d   : > { %245 = sbr.rel (%p1233_p6) target bundleno = 884 (0x374), region = 36  ;;  %s1129_s29 = sshll.u32 (!%p1233_p6), %s1126_s8, 3 }
  0x6e   : > { %s248_s11 = scalar_lea.sflag (!%p1233_p6), [#allocation3], %s1126_s8  ;;  %s251_s13 = scalar_lea.vmem (!%p1233_p6), [#allocation2], %s1129_s29 }
  0x74   : > { %877 = dma.done.wait (%p1234_p13), %s248_s11, 128  }
  0x75   : > { %879 = vsyncadd (%p1234_p13), %s248_s11, 4294967168  ;;  %s256_s25 = sand.u32 1, %s979_s21   ;;  %s260_s22 = scalar_lea.vmem [#allocation5], %s1129_s29 }
  0x76   : > { %s257_s30 = scalar_lea.sflag [#allocation6], %s256_s25 }
  0x77   : > { %881 = dma.done.wait (%p1234_p13), %s257_s30, 128  }
  0x78   : > { %883 = vsyncadd (%p1234_p13), %s257_s30, 4294967168  ;;  %p1235_p11 = scmp.eq.s32.totalorder %s979_s21, 0 }
  0x7a   : > { %885 = dma.done.wait (%p1235_p11), [#allocation6], 128   ;;  %p1236_p3 = pmov %p1235_p11 }
  0x7b   : > { %v919_v0 = vmov 0.0   ;;  %vm920_vm0 = vmmov 0   ;;  %vm304_vm1 = vcmask 261120   ;;  %v301_v1 = vld [vmem:[%s260_s22] sm:$0xff]  ;;  %v300_v2 = vld [vmem:[%s251_s13] sm:$0xff]  ;;  %p297_p12 = scmp.lt.s32.totalorder %s906_s18, 1  ;;  %v385_v3 = vlaneseq }
  0x7c   : > { %887 = vsyncadd (%p1236_p3), [#allocation6], 4294967168  ;;  %641 = vmatprep.subr.mxu0 %v919_v0  ;;  %643 = vmatprep.mubr.msk.f32.mxu0 %vm920_vm0, %v919_v0  ;;  %v921_v7 = vmov 0   ;;  %v303_v10 = vld [vmem:[#allocation7] sm:$0xff]  ;;  %vm392_vm6 = vcmask 64512   ;;  %s634_s6 = sshll.u32 %s906_s18, 7 }
  0x7d   : > { %646 = vmatprep.subr.mxu1 %v919_v0  ;;  %648 = vmatprep.mubr.msk.f32.mxu1 %vm920_vm0, %v919_v0  ;;  %s298_s23 = scalar_select %p297_p12, %s906_s18, 1  ;;  %v386_v5 = vshrl.u32 %v385_v3, 7  ;;  %vm383_vm3 = vcmp.ne.f32.partialorder %v303_v10, 0.0 }
  0x7e   : > { %642 = vmatpush3.xpose.msk.msra.mxu0 %vm304_vm1, %v301_v1  ;;  %647 = vmatpush3.msra.mxu1 %v301_v1  ;;  %s296_s3 = scalar_lea.vmem [#allocation8], %s1129_s29  ;;  %s1159_s10 = scalar_lea.hbm %s1213_s4, %s634_s6 }
  0x7f   : > { %s299_s9 = scalar_lea.vmem %s1211_s2, %s298_s23  ;;  %v387_v6 = vsub.s32 0, %v386_v5  ;;  %s493_s5 = sshll.u32 %s296_s3, 4  ;;  %s1161_s5 = int_to_ptr.vmem [resolvable:$true] %s493_s5 }
  0x80   : > { %v302_v4 = vld [vmem:[%s299_s9] sm:$0x1]  ;;  %s479_s12 = scalar_lea.sflag [#allocation4], %s1126_s8  ;;  %s824_s26 = scalar_lea.vmem %s1161_s5, 128 }
  0x81   : > { %644 = vmatmul.mubr.msk.f32.vlgmr.msra.gmra.mrb[0].mxu0 %vm304_vm1, %v300_v2  ;;  %vm382_vm2 = vcmp.ne.f32.partialorder %v302_v4, 0.0  ;;  %p825_p0 = scmp.ne.s32.totalorder %s1161_s5, %s824_s26  ;;  %p1237_p5 = scmp.ne.s32.totalorder %s1231_s28, 0 }
  0x82   : > { %v384_v8 = vsel %vm382_vm2, 1, %v921_v7  ;;  %s922_s18 = smov [#allocation8]  }
  0x83   : > { %v388_v9 = vrot.slane %v384_v8, %v387_v6  ;;  %p826_p10 = pnand %p825_p0, %p1237_p5  ;;  %s828_s29 = sshll.u32 %s922_s18, 4  ;;  %s829_s29 = int_to_ptr.vmem [resolvable:$false] %s828_s29 }
  0x84   : > { %s830_s11 = scalar_lea.vmem %s829_s29, 256  ;;  %p831_p2 = scmp.lt.s32.totalorder %s1161_s5, %s829_s29 }
  0x85   : > { %vm389_vm4 = vcmp.eq.s32.totalorder %v388_v9, 1  ;;  %p827_p1 = pneg %p826_p10  ;;  %p832_p7 = scmp.lt.s32.totalorder %s830_s11, %s824_s26 }
  0x86   : > { %vm390_vm5 = vmand %vm389_vm4, %vm383_vm3 }
  0x87   : > { %p833_p4 = por %p832_p7, %p831_p2 }
  0x89   : > { %p834_p8 = pnand %p833_p4, %p827_p1 }
 0x154   : > { %v377_v11 = vpop.f32.mrb[0].mxu0 }
 0x155   : > { %v381_v12 = vmul.f32 0.17677669, %v377_v11  ;;  %v645_v13 = vpop.f32.mrb[1].mxu0 }
 0x157   : > { %v391_v14 = vsel %vm390_vm5, %v381_v12, -1e+09 }
 0x158   : > { %v393_v15 = vsel %vm392_vm6, %v391_v14, -inf }
 0x159   : > { %394 = vmax.xlane.f32.xlu0 %v393_v15 }
 0x1e6   : > { %v395_v16 = vpop.xlane.xlu0 %394 }
 0x1e7   : > { %v396_v17 = vsub.f32 %v391_v14, %v395_v16 }
 0x1e9   : > { %v397_v18 = vmul.f32 1.442695, %v396_v17 }
 0x1eb   : > { %732 = vpow2.f32 %v397_v18 }
 0x1f5   : > { %v733_v19 = vpop.eup %732 }
 0x1f6   : > { %v399_v20 = vsel %vm392_vm6, %v733_v19, 0.0 }
 0x1f7   : > { %400 = vadd.xlane.f32.xlu0 %v399_v20 }
 0x284   : > { %v401_v21 = vpop.xlane.xlu0 %400 }
 0x285   : > { %734 = vrcp.f32 %v401_v21 }
 0x28f   : > { %v735_v22 = vpop.eup %734 }
 0x290   : > { %v403_v23 = vmul.f32 %v735_v22, %v733_v19 }
 0x292   : > { %649 = vmatmul.mubr.msk.f32.vlgmr.msra.gmra.mrb[0].mxu1 %vm392_vm6, %v403_v23 }
 0x365   : > { %v473_v24 = vpop.f32.mrb[0].mxu1 }
 0x366   : > { %477 = vst.msk [vmem:[%s296_s3] sm:$0xff] %vm304_vm1, %v473_v24  ;;  %v650_v25 = vpop.f32.mrb[1].mxu1 }
 0x367   : > { %837 = shalt.err (!%p834_p8)
}
 0x368   : > { %s838_s8 = scalar_lea.hbm %s1159_s10, 128  ;;  %s842_s30 = scalar_lea.hbm %s1213_s4, 256 }
 0x369   : > { %p839_p9 = scmp.ne.s32.totalorder %s1159_s10, %s838_s8  ;;  %p843_p11 = scmp.lt.u32.totalorder %s1159_s10, %s1213_s4 }
 0x36a   : > { %p844_p3 = scmp.lt.u32.totalorder %s842_s30, %s838_s8  ;;  %p846_p0 = scmp.lt.u32.totalorder %s838_s8, %s1159_s10 }
 0x36b   : > { %p840_p6 = pnand %p839_p9, %p1237_p5 }
 0x36c   : > { %p845_p12 = por %p844_p3, %p843_p11 }
 0x36d   : > { %p841_p13 = pneg %p840_p6 }
 0x36e   : > { %p847_p10 = por %p846_p0, %p845_p12 }
 0x370   : > { %p848_p1 = pnand %p847_p10, %p841_p13 }
 0x372   : > { %851 = shalt.err (!%p848_p1)
}
 0x373   : > { %659 = dma.vmem_to_hbm [thread:$0]  (%p1237_p5), %s1161_s5, 128, %s1159_s10, %s479_s12  }
 0x374 PF: > { %s505_s21 = sand.u32 1, %s894_s15   ;;  %p1238_p2 = scmp.ne.s32.totalorder %s1223_s24, 0 }
 0x375   : > { %p1239_p7 = scmp.ge.s32.totalorder %s914_s20, 2  ;;  %s506_s14 = scalar_lea.sflag [#allocation4], %s505_s21 }
 0x377   : > { %p673_p4 = pnand %p1239_p7, %p1238_p2 }
 0x379   : > { %889 = dma.done.wait (!%p673_p4), %s506_s14, 128  }
 0x37a   : > { %891 = vsyncadd (!%p673_p4), %s506_s14, 4294967168  ;;  %s23_s20 = sadd.s32 1, %s914_s20   ;;  %s1240_s18 = sld [smem:[#allocation13_spill]] }
 0x37b   : > { %p20_p8 = scmp.ge.s32.totalorder %s23_s20, 4   ;;  %s1241_s19 = sld [smem:[#allocation14_spill]] }
 0x37c   : > { %s1242_s15 = smov %s898_s16  ;;  %s1243_s16 = smov %s902_s17 }
 0x37d   : > { %s1244_s17 = smov %s1053_s7  ;;  %22 = sbr.rel (!%p20_p8) target bundleno = 10 (0xa), region = 102 }
 0x384   :  { %511 = vsyncpa [#allocation3], 1 }
 0x385   :  { %513 = vsyncpa [#allocation3 + $0x1], 1 }
 0x386   :  { %514 = vsyncpa [#allocation6], 1 }
 0x387   :  { %516 = vsyncpa [#allocation6 + $0x1], 1 }
 0x388   :  { %517 = vsyncpa [#allocation4], 1 }
 0x389   :  { %519 = vsyncpa [#allocation4 + $0x1], 1 }

</bundles_post_ra>
